<compile_context>
chip_gen: v7x
topology: tpu7x:2x2x1
jax: 0.10.0
libtpu: 0.0.40
codegen_flags: <defaults>
</compile_context>

<pallas_src>
import functools

import jax
import jax.numpy as jnp
from jax.experimental import pallas as pl
from jax.experimental.pallas import tpu as pltpu

LN_EPS = 1e-5  # torch.nn.LayerNorm default


def _layernorm(x, gamma, beta):
    mu = jnp.mean(x, axis=-1, keepdims=True)
    xc = x - mu                                   # hoisted: used for var AND numerator
    var = jnp.mean(xc * xc, axis=-1, keepdims=True)
    return xc * jax.lax.rsqrt(var + LN_EPS) * gamma + beta


def _relu(x):
    return jnp.maximum(x, 0.0)


def residual_block_kernel(
    z_ref, t_ref, c_ref,
    lnz_g_ref, lnz_b_ref, lnc_g_ref, lnc_b_ref,
    w_in_ref, b_in_ref,          # fused (3H, 2H) weight, folded (1, 2H) bias
    wout_ref, bout_ref,
    o_ref,
):
    z = z_ref[...].astype(jnp.float32)
    t = t_ref[...].astype(jnp.float32)
    c = c_ref[...].astype(jnp.float32)

    # LayerNorm + ReLU branches (f32 math).
    z_n = _relu(_layernorm(z, lnz_g_ref[...], lnz_b_ref[...]))
    c_n = _relu(_layernorm(c, lnc_g_ref[...], lnc_b_ref[...]))

    # Fused GEMM:  [t | z_n | c_n] @ [Wt; Wz; Wc]  ==  t@Wt + z_n@Wz + c_n@Wc
    mm_dtype = w_in_ref.dtype
    x = jnp.concatenate([t, z_n, c_n], axis=-1).astype(mm_dtype)   # (bb, 3H)
    h = jnp.dot(x, w_in_ref[...], preferred_element_type=jnp.float32) + b_in_ref[...]

    # mlp_out: ReLU -> Linear(2H, H) -> ReLU, then residual + z
    h = _relu(h).astype(mm_dtype)
    out = _relu(
        jnp.dot(h, wout_ref[...], preferred_element_type=jnp.float32) + bout_ref[...]
    )
    o_ref[...] = (out + z).astype(o_ref.dtype)


@functools.partial(jax.jit, static_argnames=("block_b", "compute_dtype"))
def residual_block(z, t, c, params, *, block_b=None, compute_dtype=None):
    B, H = z.shape
    (wt, bt, lnz_g, lnz_b, wz, bz, lnc_g, lnc_b, wc, bc, wout, bout) = params

    # --- weight packing (fused GEMM + folded bias) ---------------------------
    w_in = jnp.concatenate([wt, wz, wc], axis=0)            # (3H, 2H)
    b_in = (bt + bz + bc).astype(jnp.float32)               # (1, 2H)
    wout_k = wout
    if compute_dtype is not None:                           # e.g. jnp.bfloat16
        w_in = w_in.astype(compute_dtype)
        wout_k = wout.astype(compute_dtype)

    # --- batch tiling: largest nice divisor so the grid pipelines ------------
    if block_b is None:
        block_b = B
        for cand in (512, 256, 128, 64, 32, 16, 8):
            if B % cand == 0:
                block_b = cand
                break
    assert B % block_b == 0, "batch must be divisible by block_b"
    grid = (B // block_b,)

    act_spec = pl.BlockSpec((block_b, H), lambda i: (i, 0))
    full = lambda a: pl.BlockSpec(a.shape, lambda i: (0,) * a.ndim)

    # --- VMEM budget & cost estimate -----------------------------------------
    itemsize_w = jnp.dtype(w_in.dtype).itemsize
    weight_bytes = (w_in.size + wout_k.size) * itemsize_w
    small_bytes = (b_in.size + bout.size + lnz_g.size + lnz_b.size
                   + lnc_g.size + lnc_b.size) * 4
    act_tile_bytes = block_b * H * 4
    vmem_needed = (2 * 4 * act_tile_bytes            # z,t,c,out tiles double-buffered
                   + 2 * (weight_bytes + small_bytes)  # weights double-buffered
                   + block_b * 10 * H * 4)             # in-kernel intermediates
    vmem_limit = int(min(max(1.3 * vmem_needed, 32 * 2**20), 100 * 2**20))

    cost = pl.CostEstimate(
        flops=16 * B * H * H,                 # 12BH^2 (fused GEMM) + 4BH^2 (out GEMM)
        transcendentals=2 * B,                # one rsqrt per row per LayerNorm
        bytes_accessed=4 * B * H * 4 + weight_bytes + small_bytes,
    )

    return pl.pallas_call(
        residual_block_kernel,
        out_shape=jax.ShapeDtypeStruct((B, H), z.dtype),
        grid_spec=pltpu.PrefetchScalarGridSpec(
            num_scalar_prefetch=0,
            grid=grid,
            in_specs=[
                act_spec, act_spec, act_spec,            # z, t, c
                full(lnz_g), full(lnz_b),                # mlp_z layernorm
                full(lnc_g), full(lnc_b),                # mlp_c layernorm
                full(w_in), full(b_in),                  # fused H->2H linear
                full(wout_k), full(bout),                # mlp_out linear
            ],
            out_specs=act_spec,
        ),
        compiler_params=pltpu.CompilerParams(
            dimension_semantics=("parallel",),           # megacore-shard the batch axis
            vmem_limit_bytes=vmem_limit,
        ),
        cost_estimate=cost,
    )(z, t, c, lnz_g, lnz_b, lnc_g, lnc_b, w_in, b_in, wout_k, bout)
    # TODO(synk): for H large enough that 2*weight_bytes stops fitting VMEM
    # (~H>1.4K on v7x), add an N-tiling grid axis over the 2H dimension.


def init_params(key, h_dim):
    """Deterministic synthetic parameters. Linear weights stored as (in, out)."""
    ks = jax.random.split(key, 8)
    s_h = 1.0 / jnp.sqrt(h_dim)
    s_2h = 1.0 / jnp.sqrt(2 * h_dim)
    wt = jax.random.uniform(ks[0], (h_dim, 2 * h_dim), jnp.float32, -s_h, s_h)
    bt = jax.random.uniform(ks[1], (1, 2 * h_dim), jnp.float32, -s_h, s_h)
    lnz_g = jnp.ones((1, h_dim), jnp.float32)
    lnz_b = jnp.zeros((1, h_dim), jnp.float32)
    wz = jax.random.uniform(ks[2], (h_dim, 2 * h_dim), jnp.float32, -s_h, s_h)
    bz = jax.random.uniform(ks[3], (1, 2 * h_dim), jnp.float32, -s_h, s_h)
    lnc_g = jnp.ones((1, h_dim), jnp.float32)
    lnc_b = jnp.zeros((1, h_dim), jnp.float32)
    wc = jax.random.uniform(ks[4], (h_dim, 2 * h_dim), jnp.float32, -s_h, s_h)
    bc = jax.random.uniform(ks[5], (1, 2 * h_dim), jnp.float32, -s_h, s_h)
    wout = jax.random.uniform(ks[6], (2 * h_dim, h_dim), jnp.float32, -s_2h, s_2h)
    bout = jax.random.uniform(ks[7], (1, h_dim), jnp.float32, -s_2h, s_2h)
    return (wt, bt, lnz_g, lnz_b, wz, bz, lnc_g, lnc_b, wc, bc, wout, bout)


def residual_block_ref(z, t, c, params):
    """Pure-JAX reference implementing the exact PyTorch forward."""
    (wt, bt, lnz_g, lnz_b, wz, bz, lnc_g, lnc_b, wc, bc, wout, bout) = params
    h_t = t @ wt + bt
    h_z = _relu(_layernorm(z, lnz_g, lnz_b)) @ wz + bz
    h_c = _relu(_layernorm(c, lnc_g, lnc_b)) @ wc + bc
    return _relu(_relu(h_z + h_t + h_c) @ wout + bout) + z


if __name__ == "__main__":
    B, H = 32, 32
    key = jax.random.PRNGKey(0)
    kz, kt, kc, kp = jax.random.split(key, 4)
    z = jax.random.normal(kz, (B, H), jnp.float32)
    t = jax.random.normal(kt, (B, H), jnp.float32)
    c = jax.random.normal(kc, (B, H), jnp.float32)
    params = init_params(kp, H)

    ref = residual_block_ref(z, t, c, params)

    # f32 path with an explicit multi-step grid (exercises pipelining + megacore).
    out = residual_block(z, t, c, params, block_b=8)
    jax.block_until_ready(out)
    assert out.shape == (B, H) and out.dtype == jnp.float32
    assert jnp.allclose(out, ref, atol=1e-4, rtol=1e-4), float(
        jnp.max(jnp.abs(out - ref))
    )

    # bf16-weight path (MXU fast path); f32 accumulation, looser tolerance.
    out_bf16 = residual_block(z, t, c, params, compute_dtype=jnp.bfloat16)
    jax.block_until_ready(out_bf16)
    assert jnp.allclose(out_bf16, ref, atol=0.15, rtol=0.1), float(
        jnp.max(jnp.abs(out_bf16 - ref))
    )

    print("KERNEL_OK")
</pallas_src>

<mosaic_0001>
module attributes {stable_mosaic.version = 11 : i64} {
  func.func @residual_block_kernel(%arg0: i32, %arg1: memref<8x32xf32, #tpu.memory_space<vmem>>, %arg2: memref<8x32xf32, #tpu.memory_space<vmem>>, %arg3: memref<8x32xf32, #tpu.memory_space<vmem>>, %arg4: memref<1x32xf32, #tpu.memory_space<vmem>>, %arg5: memref<1x32xf32, #tpu.memory_space<vmem>>, %arg6: memref<1x32xf32, #tpu.memory_space<vmem>>, %arg7: memref<1x32xf32, #tpu.memory_space<vmem>>, %arg8: memref<96x64xf32, #tpu.memory_space<vmem>>, %arg9: memref<1x64xf32, #tpu.memory_space<vmem>>, %arg10: memref<64x32xf32, #tpu.memory_space<vmem>>, %arg11: memref<1x32xf32, #tpu.memory_space<vmem>>, %arg12: memref<8x32xf32, #tpu.memory_space<vmem>>) attributes {dimension_semantics = [#tpu.dimension_semantics<parallel>], iteration_bounds = array<i64: 4>, scalar_prefetch = 0 : i64, scratch_operands = 0 : i64, tpu.core_type = #tpu.core_type<tc>, window_params = [{transform_indices = @transform_0, window_bounds = array<i64: 8, 32>}, {transform_indices = @transform_1, window_bounds = array<i64: 8, 32>}, {transform_indices = @transform_2, window_bounds = array<i64: 8, 32>}, {pipeline_mode = #tpu.pipeline_mode<synchronous>, transform_indices = @transform_3, window_bounds = array<i64: 1, 32>}, {pipeline_mode = #tpu.pipeline_mode<synchronous>, transform_indices = @transform_4, window_bounds = array<i64: 1, 32>}, {pipeline_mode = #tpu.pipeline_mode<synchronous>, transform_indices = @transform_5, window_bounds = array<i64: 1, 32>}, {pipeline_mode = #tpu.pipeline_mode<synchronous>, transform_indices = @transform_6, window_bounds = array<i64: 1, 32>}, {pipeline_mode = #tpu.pipeline_mode<synchronous>, transform_indices = @transform_7, window_bounds = array<i64: 96, 64>}, {pipeline_mode = #tpu.pipeline_mode<synchronous>, transform_indices = @transform_8, window_bounds = array<i64: 1, 64>}, {pipeline_mode = #tpu.pipeline_mode<synchronous>, transform_indices = @transform_9, window_bounds = array<i64: 64, 32>}, {pipeline_mode = #tpu.pipeline_mode<synchronous>, transform_indices = @transform_10, window_bounds = array<i64: 1, 32>}, {transform_indices = @transform_11, window_bounds = array<i64: 8, 32>}]} {
    %c0 = arith.constant 0 : index
    %c0_0 = arith.constant 0 : index
    %0 = vector.load %arg1[%c0, %c0_0] : memref<8x32xf32, #tpu.memory_space<vmem>>, vector<8x32xf32>
    %c0_1 = arith.constant 0 : index
    %c0_2 = arith.constant 0 : index
    %1 = vector.load %arg2[%c0_1, %c0_2] : memref<8x32xf32, #tpu.memory_space<vmem>>, vector<8x32xf32>
    %c0_3 = arith.constant 0 : index
    %c0_4 = arith.constant 0 : index
    %2 = vector.load %arg3[%c0_3, %c0_4] : memref<8x32xf32, #tpu.memory_space<vmem>>, vector<8x32xf32>
    %c0_5 = arith.constant 0 : index
    %c0_6 = arith.constant 0 : index
    %3 = vector.load %arg4[%c0_5, %c0_6] : memref<1x32xf32, #tpu.memory_space<vmem>>, vector<1x32xf32>
    %c0_7 = arith.constant 0 : index
    %c0_8 = arith.constant 0 : index
    %4 = vector.load %arg5[%c0_7, %c0_8] : memref<1x32xf32, #tpu.memory_space<vmem>>, vector<1x32xf32>
    %cst = arith.constant dense<0.000000e+00> : vector<8xf32>
    %5 = vector.multi_reduction <add>, %0, %cst [1] : vector<8x32xf32> to vector<8xf32>
    %6 = vector.shape_cast %5 : vector<8xf32> to vector<8x1xf32>
    %cst_9 = arith.constant 3.200000e+01 : f32
    %7 = vector.broadcast %cst_9 : f32 to vector<8x1xf32>
    %8 = arith.divf %6, %7 : vector<8x1xf32>
    %9 = vector.broadcast %8 : vector<8x1xf32> to vector<8x32xf32>
    %10 = arith.subf %0, %9 : vector<8x32xf32>
    %11 = arith.mulf %10, %10 : vector<8x32xf32>
    %cst_10 = arith.constant dense<0.000000e+00> : vector<8xf32>
    %12 = vector.multi_reduction <add>, %11, %cst_10 [1] : vector<8x32xf32> to vector<8xf32>
    %13 = vector.shape_cast %12 : vector<8xf32> to vector<8x1xf32>
    %cst_11 = arith.constant 3.200000e+01 : f32
    %14 = vector.broadcast %cst_11 : f32 to vector<8x1xf32>
    %15 = arith.divf %13, %14 : vector<8x1xf32>
    %cst_12 = arith.constant 9.99999974E-6 : f32
    %16 = vector.broadcast %cst_12 : f32 to vector<8x1xf32>
    %17 = arith.addf %15, %16 : vector<8x1xf32>
    %18 = math.rsqrt %17 : vector<8x1xf32>
    %19 = vector.broadcast %18 : vector<8x1xf32> to vector<8x32xf32>
    %20 = arith.mulf %10, %19 : vector<8x32xf32>
    %21 = vector.broadcast %3 : vector<1x32xf32> to vector<8x32xf32>
    %22 = arith.mulf %20, %21 : vector<8x32xf32>
    %23 = vector.broadcast %4 : vector<1x32xf32> to vector<8x32xf32>
    %24 = arith.addf %22, %23 : vector<8x32xf32>
    %cst_13 = arith.constant 0.000000e+00 : f32
    %25 = vector.broadcast %cst_13 : f32 to vector<8x32xf32>
    %26 = arith.maximumf %24, %25 : vector<8x32xf32>
    %c0_14 = arith.constant 0 : index
    %c0_15 = arith.constant 0 : index
    %27 = vector.load %arg6[%c0_14, %c0_15] : memref<1x32xf32, #tpu.memory_space<vmem>>, vector<1x32xf32>
    %c0_16 = arith.constant 0 : index
    %c0_17 = arith.constant 0 : index
    %28 = vector.load %arg7[%c0_16, %c0_17] : memref<1x32xf32, #tpu.memory_space<vmem>>, vector<1x32xf32>
    %cst_18 = arith.constant dense<0.000000e+00> : vector<8xf32>
    %29 = vector.multi_reduction <add>, %2, %cst_18 [1] : vector<8x32xf32> to vector<8xf32>
    %30 = vector.shape_cast %29 : vector<8xf32> to vector<8x1xf32>
    %cst_19 = arith.constant 3.200000e+01 : f32
    %31 = vector.broadcast %cst_19 : f32 to vector<8x1xf32>
    %32 = arith.divf %30, %31 : vector<8x1xf32>
    %33 = vector.broadcast %32 : vector<8x1xf32> to vector<8x32xf32>
    %34 = arith.subf %2, %33 : vector<8x32xf32>
    %35 = arith.mulf %34, %34 : vector<8x32xf32>
    %cst_20 = arith.constant dense<0.000000e+00> : vector<8xf32>
    %36 = vector.multi_reduction <add>, %35, %cst_20 [1] : vector<8x32xf32> to vector<8xf32>
    %37 = vector.shape_cast %36 : vector<8xf32> to vector<8x1xf32>
    %cst_21 = arith.constant 3.200000e+01 : f32
    %38 = vector.broadcast %cst_21 : f32 to vector<8x1xf32>
    %39 = arith.divf %37, %38 : vector<8x1xf32>
    %cst_22 = arith.constant 9.99999974E-6 : f32
    %40 = vector.broadcast %cst_22 : f32 to vector<8x1xf32>
    %41 = arith.addf %39, %40 : vector<8x1xf32>
    %42 = math.rsqrt %41 : vector<8x1xf32>
    %43 = vector.broadcast %42 : vector<8x1xf32> to vector<8x32xf32>
    %44 = arith.mulf %34, %43 : vector<8x32xf32>
    %45 = vector.broadcast %27 : vector<1x32xf32> to vector<8x32xf32>
    %46 = arith.mulf %44, %45 : vector<8x32xf32>
    %47 = vector.broadcast %28 : vector<1x32xf32> to vector<8x32xf32>
    %48 = arith.addf %46, %47 : vector<8x32xf32>
    %cst_23 = arith.constant 0.000000e+00 : f32
    %49 = vector.broadcast %cst_23 : f32 to vector<8x32xf32>
    %50 = arith.maximumf %48, %49 : vector<8x32xf32>
    %51 = tpu.concatenate %1, %26, %50 in 1 : vector<8x32xf32>, vector<8x32xf32>, vector<8x32xf32> -> vector<8x96xf32>
    %c0_24 = arith.constant 0 : index
    %c0_25 = arith.constant 0 : index
    %52 = vector.load %arg8[%c0_24, %c0_25] : memref<96x64xf32, #tpu.memory_space<vmem>>, vector<96x64xf32>
    %cst_26 = arith.constant dense<0.000000e+00> : vector<8x64xf32>
    %53 = tpu.matmul %51, %52, %cst_26 {dimension_numbers = #tpu.dot_dimension_numbers<[1], [0], [0], [1], [0, 0, 1, 1], [], []>} : vector<8x96xf32>, vector<96x64xf32>, vector<8x64xf32> -> vector<8x64xf32>
    %c0_27 = arith.constant 0 : index
    %c0_28 = arith.constant 0 : index
    %54 = vector.load %arg9[%c0_27, %c0_28] : memref<1x64xf32, #tpu.memory_space<vmem>>, vector<1x64xf32>
    %55 = vector.broadcast %54 : vector<1x64xf32> to vector<8x64xf32>
    %56 = arith.addf %53, %55 : vector<8x64xf32>
    %cst_29 = arith.constant 0.000000e+00 : f32
    %57 = vector.broadcast %cst_29 : f32 to vector<8x64xf32>
    %58 = arith.maximumf %56, %57 : vector<8x64xf32>
    %c0_30 = arith.constant 0 : index
    %c0_31 = arith.constant 0 : index
    %59 = vector.load %arg10[%c0_30, %c0_31] : memref<64x32xf32, #tpu.memory_space<vmem>>, vector<64x32xf32>
    %cst_32 = arith.constant dense<0.000000e+00> : vector<8x32xf32>
    %60 = tpu.matmul %58, %59, %cst_32 {dimension_numbers = #tpu.dot_dimension_numbers<[1], [0], [0], [1], [0, 0, 1, 1], [], []>} : vector<8x64xf32>, vector<64x32xf32>, vector<8x32xf32> -> vector<8x32xf32>
    %c0_33 = arith.constant 0 : index
    %c0_34 = arith.constant 0 : index
    %61 = vector.load %arg11[%c0_33, %c0_34] : memref<1x32xf32, #tpu.memory_space<vmem>>, vector<1x32xf32>
    %62 = vector.broadcast %61 : vector<1x32xf32> to vector<8x32xf32>
    %63 = arith.addf %60, %62 : vector<8x32xf32>
    %cst_35 = arith.constant 0.000000e+00 : f32
    %64 = vector.broadcast %cst_35 : f32 to vector<8x32xf32>
    %65 = arith.maximumf %63, %64 : vector<8x32xf32>
    %66 = arith.addf %65, %0 : vector<8x32xf32>
    %c0_36 = arith.constant 0 : index
    %c0_37 = arith.constant 0 : index
    %67 = vector.load %arg12[%c0_36, %c0_37] : memref<8x32xf32, #tpu.memory_space<vmem>>, vector<8x32xf32>
    tpu.vector_store %arg12[%c0_36, %c0_37], %66 {strides = array<i32>} : memref<8x32xf32, #tpu.memory_space<vmem>>, vector<8x32xf32>,
    return
  }
  func.func @transform_0(%arg0: i32) -> (i32, i32) {
    %c0_i32 = arith.constant 0 : i32
    %c0_i32_0 = arith.constant 0 : i32
    return %arg0, %c0_i32 : i32, i32
  }
  func.func @transform_1(%arg0: i32) -> (i32, i32) {
    %c0_i32 = arith.constant 0 : i32
    %c0_i32_0 = arith.constant 0 : i32
    return %arg0, %c0_i32 : i32, i32
  }
  func.func @transform_2(%arg0: i32) -> (i32, i32) {
    %c0_i32 = arith.constant 0 : i32
    %c0_i32_0 = arith.constant 0 : i32
    return %arg0, %c0_i32 : i32, i32
  }
  func.func @transform_3(%arg0: i32) -> (i32, i32) {
    %c0_i32 = arith.constant 0 : i32
    %c0_i32_0 = arith.constant 0 : i32
    %c0_i32_1 = arith.constant 0 : i32
    return %c0_i32, %c0_i32_0 : i32, i32
  }
  func.func @transform_4(%arg0: i32) -> (i32, i32) {
    %c0_i32 = arith.constant 0 : i32
    %c0_i32_0 = arith.constant 0 : i32
    %c0_i32_1 = arith.constant 0 : i32
    return %c0_i32, %c0_i32_0 : i32, i32
  }
  func.func @transform_5(%arg0: i32) -> (i32, i32) {
    %c0_i32 = arith.constant 0 : i32
    %c0_i32_0 = arith.constant 0 : i32
    %c0_i32_1 = arith.constant 0 : i32
    return %c0_i32, %c0_i32_0 : i32, i32
  }
  func.func @transform_6(%arg0: i32) -> (i32, i32) {
    %c0_i32 = arith.constant 0 : i32
    %c0_i32_0 = arith.constant 0 : i32
    %c0_i32_1 = arith.constant 0 : i32
    return %c0_i32, %c0_i32_0 : i32, i32
  }
  func.func @transform_7(%arg0: i32) -> (i32, i32) {
    %c0_i32 = arith.constant 0 : i32
    %c0_i32_0 = arith.constant 0 : i32
    %c0_i32_1 = arith.constant 0 : i32
    return %c0_i32, %c0_i32_0 : i32, i32
  }
  func.func @transform_8(%arg0: i32) -> (i32, i32) {
    %c0_i32 = arith.constant 0 : i32
    %c0_i32_0 = arith.constant 0 : i32
    %c0_i32_1 = arith.constant 0 : i32
    return %c0_i32, %c0_i32_0 : i32, i32
  }
  func.func @transform_9(%arg0: i32) -> (i32, i32) {
    %c0_i32 = arith.constant 0 : i32
    %c0_i32_0 = arith.constant 0 : i32
    %c0_i32_1 = arith.constant 0 : i32
    return %c0_i32, %c0_i32_0 : i32, i32
  }
  func.func @transform_10(%arg0: i32) -> (i32, i32) {
    %c0_i32 = arith.constant 0 : i32
    %c0_i32_0 = arith.constant 0 : i32
    %c0_i32_1 = arith.constant 0 : i32
    return %c0_i32, %c0_i32_0 : i32, i32
  }
  func.func @transform_11(%arg0: i32) -> (i32, i32) {
    %c0_i32 = arith.constant 0 : i32
    %c0_i32_0 = arith.constant 0 : i32
    return %arg0, %c0_i32 : i32, i32
  }
}

</mosaic_0001>

<bundles_post_ra>
// kernel: residual_block.1
= control target key start
LH: loop header
LB: loop body
LE: loop exit
PB: predicated region body
PF: predicated region fallthrough
CT: control target
= control target key end

     0   :  { %s1285_s0 = inlined_call_operand.vmem [shape: f32[32,32], index: 0, kind: input, shape index: {}]   ;;  %s1286_s1 = inlined_call_operand.vmem [shape: f32[32,32], index: 1, kind: input, shape index: {}]   ;;  %s1287_s2 = inlined_call_operand.vmem [shape: f32[32,32], index: 2, kind: input, shape index: {}]   ;;  %s1288_s3 = inlined_call_operand.vmem [shape: f32[1,32], index: 3, kind: input, shape index: {}]   ;;  %s1289_s4 = inlined_call_operand.vmem [shape: f32[1,32], index: 4, kind: input, shape index: {}]   ;;  %s1290_s5 = inlined_call_operand.vmem [shape: f32[1,32], index: 5, kind: input, shape index: {}]   ;;  %s1291_s6 = inlined_call_operand.vmem [shape: f32[1,32], index: 6, kind: input, shape index: {}]   ;;  %s1292_s7 = inlined_call_operand.vmem [shape: f32[96,64], index: 7, kind: input, shape index: {}]   ;;  %s1293_s8 = inlined_call_operand.vmem [shape: f32[1,64], index: 8, kind: input, shape index: {}]   ;;  %s1294_s9 = inlined_call_operand.vmem [shape: f32[64,32], index: 9, kind: input, shape index: {}]   ;;  %s1295_s10 = inlined_call_operand.vmem [shape: f32[1,32], index: 10, kind: input, shape index: {}]   ;;  %s1296_s11 = inlined_call_operand.hbm [shape: f32[32,32], index: 11, kind: output, shape index: {}]  }
   0x1   :  { %1297 = sst [smem:[#allocation5_spill]] %s1285_s0 }
   0x2   :  { %16 = vsyncpa [#allocation3], 0 }
   0x3   :  { %18 = vsyncpa [#allocation3 + $0x1], 0  ;;  %s1070_s17 = smov 0   ;;  %s1072_s18 = smov 0  }
   0x4   :  { %s1074_s19 = smov 0   ;;  %s1076_s20 = smov 0  }
   0x5 LB: > { %s1091_s21 = sadd.s32 4294967295, %s1002_s20   ;;  %s774_s22 = sadd.s32 4294967294, %s1002_s20   ;;  %s1002_s20 = sphi %s1076_s20, %s1304_s20   ;;  %s998_s19 = sphi %s1074_s19, %s1303_s19   ;;  %s994_s18 = sphi %s1072_s18, %s1302_s18   ;;  %s990_s17 = sphi %s1070_s17, %s1301_s17  }
   0x6   : > { %s1095_s23 = sadd.s32 1, %s1002_s20   ;;  %s277_s24 = sadd.s32 1, %s998_s19 }
   0x7   : > { %s274_s25 = ssub.s32 %s1002_s20, %s1095_s23  ;;  %p287_p0 = scmp.ne.s32.totalorder %s998_s19, %s994_s18 }
   0x8   : > { %p275_p1 = scmp.eq.s32.totalorder %s274_s25, 0  ;;  %p288_p2 = scmp.eq.s32.totalorder %s1091_s21, 3 }
   0x9   : > { %p293_p3 = scmp.ne.s32.totalorder %s994_s18, %s990_s17  ;;  %p294_p4 = scmp.eq.s32.totalorder %s774_s22, 3 }
   0xa   : > { %s1106_s26 = scalar_select %p275_p1, %s998_s19, %s277_s24  }
   0xb   : > { %p1108_p5 = por %p288_p2, %p287_p0  ;;  %p1112_p6 = por %p294_p4, %p293_p3 }
   0xc   : > { %p777_p7 = scmp.ge.s32.totalorder %s1002_s20, 1  ;;  %p357_p8 = scmp.lt.s32.totalorder %s1002_s20, 5 }
   0xe   : > { %p358_p9 = pnand %p777_p7, %p357_p8 }
   0xf   : > { %p404_p10 = scmp.lt.s32.totalorder (!%p358_p9), %s1091_s21, 3  ;;  %vm421_vm0 = vcmask (!%p358_p9), 261120   ;;  %s1300_s0 = sld [smem:[#allocation5_spill]] (!%p358_p9)  ;;  %v492_v14 = vld [vmem:[%s1292_s7] sm:$0xff] (!%p358_p9)  ;;  %v493_v15 = vld [vmem:[%s1292_s7 + $0x8] sm:$0xff] (!%p358_p9)  ;;  %v494_v16 = vld [vmem:[%s1292_s7 + $0x10] sm:$0xff] (!%p358_p9) }
  0x10   : > { %361 = sbr.rel (%p358_p9) target bundleno = 911 (0x38f), region = 64  ;;  %v1004_v17 = vmov (!%p358_p9), 0.0|0.0   ;;  %v863_v18 = vpack.c.bf16 (!%p358_p9), %v493_v15, %v492_v14  ;;  %v495_v19 = vld [vmem:[%s1292_s7 + $0x18] sm:$0xff] (!%p358_p9)  ;;  %v496_v21 = vld [vmem:[%s1292_s7 + $0x20] sm:$0xff] (!%p358_p9)  ;;  %v497_v22 = vld [vmem:[%s1292_s7 + $0x28] sm:$0xff] (!%p358_p9)  ;;  %vm1005_vm1 = vmmov (!%p358_p9), 0  }
  0x11   : > { %862 = vmatprep.subr.bf16.mxu0 (!%p358_p9), %v1004_v17  ;;  %880 = vmatprep.subr.bf16.mxu1 (!%p358_p9), %v1004_v17  ;;  %v866_v20 = vpack.c.bf16 (!%p358_p9), %v495_v19, %v494_v16  ;;  %v869_v23 = vpack.c.bf16 (!%p358_p9), %v497_v22, %v496_v21  ;;  %v498_v24 = vld [vmem:[%s1292_s7 + $0x30] sm:$0xff] (!%p358_p9)  ;;  %v499_v25 = vld [vmem:[%s1292_s7 + $0x38] sm:$0xff] (!%p358_p9)  ;;  %v500_v27 = vld [vmem:[%s1292_s7 + $0x40] sm:$0xff] (!%p358_p9)  ;;  %v1006_v41 = vmov (!%p358_p9), 0.0   ;;  %s1007_s15 = smov (!%p358_p9), 32   ;;  %s1008_s16 = smov (!%p358_p9), 64  }
  0x12   : > { %864 = vmatpush3.bf16.msra.mxu0 (!%p358_p9), %v863_v18  ;;  %v872_v26 = vpack.c.bf16 (!%p358_p9), %v499_v25, %v498_v24  ;;  %v501_v28 = vld [vmem:[%s1292_s7 + $0x48] sm:$0xff] (!%p358_p9)  ;;  %v502_v36 = vld [vmem:[%s1292_s7 + $0x50] sm:$0xff] (!%p358_p9)  ;;  %v503_v37 = vld [vmem:[%s1292_s7 + $0x58] sm:$0xff] (!%p358_p9)  ;;  %840 = vmatprep.mubr.msk.f32.mxu0 (!%p358_p9), %vm1005_vm1, %v1006_v41  ;;  %vm490_vm2 = vcmask (!%p358_p9), 523264   ;;  %vm511_vm3 = vcmask (!%p358_p9), 785408  }
  0x13   : > { %865 = vmatprep.subr.bf16.mxu0 (!%p358_p9), %v1004_v17  ;;  %v875_v29 = vpack.c.bf16 (!%p358_p9), %v501_v28, %v500_v27  ;;  %v878_v38 = vpack.c.bf16 (!%p358_p9), %v503_v37, %v502_v36  ;;  %v782_v40 = vld [vmem:[%s1288_s3] ss:$0 sm:$0xff] (!%p358_p9)  ;;  %859 = vmatprep.mubr.msk.f32.mxu1 (!%p358_p9), %vm1005_vm1, %v1006_v41  ;;  %v587_v44 = vld [vmem:[%s1294_s9 + $0x8] sm:$0xff] (!%p358_p9)  ;;  %v588_v45 = vld [vmem:[%s1294_s9 + $0x10] sm:$0xff] (!%p358_p9) }
  0x14   : > { %v586_v43 = vld [vmem:[%s1294_s9] sm:$0xff] (!%p358_p9)  ;;  %v589_v48 = vld [vmem:[%s1294_s9 + $0x18] sm:$0xff] (!%p358_p9)  ;;  %v591_v56 = vld [vmem:[%s1294_s9 + $0x28] sm:$0xff] (!%p358_p9) }
  0x15   : > { %v783_v46 = vld [vmem:[%s1289_s4] ss:$0 sm:$0xff] (!%p358_p9)  ;;  %v881_v47 = vpack.c.bf16 (!%p358_p9), %v587_v44, %v586_v43  ;;  %v884_v52 = vpack.c.bf16 (!%p358_p9), %v589_v48, %v588_v45 }
  0x16   : > { %867 = vmatpush3.bf16.msra.mxu0 (!%p358_p9), %v866_v20  ;;  %v784_v51 = vld [vmem:[%s1290_s5] ss:$0 sm:$0xff] (!%p358_p9) }
  0x17   : > { %s405_s29 = scalar_select %p404_p10, %s1091_s21, 3  ;;  %868 = vmatprep.subr.bf16.mxu0 %v1004_v17  ;;  %882 = vmatpush3.bf16.msra.mxu1 %v881_v47  ;;  %v590_v55 = vld [vmem:[%s1294_s9 + $0x20] sm:$0xff] }
  0x18   : > { %883 = vmatprep.subr.bf16.mxu1 %v1004_v17  ;;  %v785_v57 = vld [vmem:[%s1291_s6] ss:$0 sm:$0xff]  ;;  %v887_v60 = vpack.c.bf16 %v591_v56, %v590_v55 }
  0x19   : > { %s1120_s30 = sshll.u32 %s405_s29, 3 }
  0x1a   : > { %s407_s14 = scalar_lea.vmem %s1300_s0, %s1120_s30  ;;  %s415_s22 = scalar_lea.vmem %s1287_s2, %s1120_s30  ;;  %870 = vmatpush3.bf16.msra.mxu0 %v869_v23 }
  0x1b   : > { %v1130_v0 = vld [vmem:[%s407_s14] sm:$0xff]  ;;  %871 = vmatprep.subr.bf16.mxu0 %v1004_v17  ;;  %885 = vmatpush3.bf16.msra.mxu1 %v884_v52  ;;  %s411_s25 = scalar_lea.vmem %s1286_s1, %s1120_s30 }
  0x1c   : > { %v418_v1 = vld [vmem:[%s415_s22] sm:$0xff]  ;;  %v422_v2 = vsel %vm421_vm0, %v1130_v0, 0.0  ;;  %886 = vmatprep.subr.bf16.mxu1 %v1004_v17 }
  0x1d   : > { %423 = vadd.xlane.f32.xlu0 %v422_v2  ;;  %v453_v3 = vsel %vm421_vm0, %v418_v1, 0.0  ;;  %v417_v63 = vld [vmem:[%s411_s25] sm:$0xff]  ;;  %s791_s25 = sshll.u32 %s1091_s21, 7  ;;  %s1009_s21 = smov [#allocation2]  }
  0x1e   : > { %873 = vmatpush3.bf16.msra.mxu0 %v872_v26  ;;  %s1242_s30 = scalar_lea.hbm %s1296_s11, %s791_s25 }
  0x1f   : > { %874 = vmatprep.subr.bf16.mxu0 %v1004_v17  ;;  %888 = vmatpush3.bf16.msra.mxu1 %v887_v60 }
  0x20   : > { %889 = vmatprep.subr.bf16.mxu1 %v1004_v17 }
  0x21   : > { %454 = vadd.xlane.f32.xlu0 %v453_v3 }
  0x22   : > { %876 = vmatpush3.bf16.msra.mxu0 %v875_v29 }
  0x23   : > { %877 = vmatprep.subr.bf16.mxu0 %v1004_v17 }
  0x26   : > { %879 = vmatpush3.bf16.msra.mxu0 %v878_v38 }
  0xaa   : > { %v424_v4 = vpop.xlane.xlu0 %423 }
  0xab   : > { %v426_v5 = vmul.f32 0.03125, %v424_v4 }
  0xad   : > { %v427_v6 = vsub.f32 %v1130_v0, %v426_v5  ;;  %v592_v5 = vld [vmem:[%s1294_s9 + $0x30] sm:$0xff] }
  0xae   : > { %v455_v7 = vpop.xlane.xlu0 %454 }
  0xaf   : > { %v456_v8 = vmul.f32 0.03125, %v455_v7  ;;  %v428_v9 = vmul.f32 %v427_v6, %v427_v6 }
  0xb1   : > { %v1136_v10 = vsub.f32 %v418_v1, %v456_v8  ;;  %v429_v11 = vsel %vm421_vm0, %v428_v9, 0.0  ;;  %v786_v8 = vld [vmem:[%s1293_s8] ss:$0 sm:$0xff] }
  0xb2   : > { %430 = vadd.xlane.f32.xlu1 %v429_v11 }
  0xb3   : > { %v458_v12 = vmul.f32 %v1136_v10, %v1136_v10 }
  0xb5   : > { %v459_v13 = vsel %vm421_vm0, %v458_v12, 0.0 }
  0xb6   : > { %460 = vadd.xlane.f32.xlu1 %v459_v13  ;;  %v788_v13 = vld [vmem:[%s1295_s10] ss:$0 sm:$0xff] }
 0x13f   : > { %v431_v30 = vpop.xlane.xlu1 %430 }
 0x140   : > { %v432_v31 = vmul.f32 0.03125, %v431_v30 }
 0x142   : > { %v433_v32 = vadd.f32 1e-05, %v432_v31 }
 0x143   : > { %v461_v33 = vpop.xlane.xlu1 %460 }
 0x144   : > { %936 = vrsqrt.f32 %v433_v32  ;;  %v462_v34 = vmul.f32 0.03125, %v461_v33 }
 0x146   : > { %v463_v35 = vadd.f32 1e-05, %v462_v34 }
 0x148   : > { %938 = vrsqrt.f32 %v463_v35 }
 0x14e   : > { %v937_v39 = vpop.eup %936 }
 0x14f   : > { %v435_v42 = vmul.f32 %v937_v39, %v427_v6  ;;  %v593_v6 = vld [vmem:[%s1294_s9 + $0x38] sm:$0xff] }
 0x150   : > { %v890_v7 = vpack.c.bf16 %v593_v6, %v592_v5 }
 0x151   : > { %v442_v49 = vmul.f32 %v782_v40, %v435_v42 }
 0x152   : > { %v939_v50 = vpop.eup %938  ;;  %891 = vmatpush3.bf16.msra.mxu1 %v890_v7 }
 0x153   : > { %v449_v53 = vadd.f32 %v783_v46, %v442_v49  ;;  %v465_v54 = vmul.f32 %v939_v50, %v1136_v10 }
 0x155   : > { %v450_v58 = vmax.f32 %v449_v53, 0.0  ;;  %v472_v59 = vmul.f32 %v784_v51, %v465_v54 }
 0x157   : > { %482 = vrot.lane.b32.xlu0 %v450_v58, %s1007_s15  ;;  %v479_v61 = vadd.f32 %v785_v57, %v472_v59  ;;  %s401_s15 = sand.u32 1, %s994_s18  }
 0x158   : > { %s678_s14 = scalar_lea.sflag [#allocation3], %s401_s15 }
 0x159   : > { %v480_v62 = vmax.f32 %v479_v61, 0.0 }
 0x15b   : > { %486 = vrot.lane.b32.xlu1 %v480_v62, %s1008_s16  ;;  %s778_s16 = sshll.u32 %s401_s15, 3 }
 0x15c   : > { %s403_s29 = scalar_lea.vmem [#allocation2], %s778_s16  ;;  %s944_s16 = sshll.u32 %s1009_s21, 4  ;;  %s945_s16 = int_to_ptr.vmem [resolvable:$false] %s944_s16 }
 0x15d   : > { %s691_s12 = sshll.u32 %s403_s29, 4  ;;  %s946_s24 = scalar_lea.vmem %s945_s16, 256  ;;  %s1244_s12 = int_to_ptr.vmem [resolvable:$true] %s691_s12 }
 0x15e   : > { %s940_s22 = scalar_lea.vmem %s1244_s12, 128  ;;  %p947_p0 = scmp.lt.s32.totalorder %s1244_s12, %s945_s16 }
 0x15f   : > { %p941_p11 = scmp.ne.s32.totalorder %s1244_s12, %s940_s22  ;;  %p948_p1 = scmp.lt.s32.totalorder %s946_s24, %s940_s22 }
 0x161   : > { %p942_p12 = pnand %p941_p11, %p1108_p5  ;;  %p949_p2 = por %p948_p1, %p947_p0 }
 0x163   : > { %p943_p13 = pneg %p942_p12 }
 0x165   : > { %p950_p3 = pnand %p949_p2, %p943_p13 }
 0x1c9   : > { %v483_v1 = vpop.permute.xlu0 %482 }
 0x1ca   : > { %v489_v2 = vsel %vm421_vm0, %v417_v63, %v483_v1 }
 0x1cd   : > { %v487_v3 = vpop.permute.xlu1 %486 }
 0x1ce   : > { %v491_v4 = vsel %vm490_vm2, %v489_v2, %v487_v3 }
 0x1cf   : > { %841 = vmatmul.mubr.msk.f32.vlgmr.msra.gmra.mrb[0].mxu0 %vm511_vm3, %v491_v4 }
 0x2a2   : > { %v581_v9 = vpop.f32.mrb[0].mxu0 }
 0x2a3   : > { %v582_v10 = vadd.f32 %v786_v8, %v581_v9  ;;  %v842_v11 = vpop.f32.mrb[1].mxu0 }
 0x2a5   : > { %v585_v12 = vmax.f32 %v582_v10, 0.0 }
 0x2a7   : > { %860 = vmatmul.mubr.msk.f32.vlgmr.msra.gmra.mrb[0].mxu1 %vm490_vm2, %v585_v12 }
 0x37a   : > { %v670_v14 = vpop.f32.mrb[0].mxu1 }
 0x37b   : > { %v671_v15 = vadd.f32 %v788_v13, %v670_v14  ;;  %v861_v16 = vpop.f32.mrb[1].mxu1 }
 0x37d   : > { %v674_v17 = vmax.f32 %v671_v15, 0.0 }
 0x37f   : > { %v675_v18 = vadd.f32 %v674_v17, %v1130_v0 }
 0x381   : > { %676 = vst.msk [vmem:[%s403_s29] sm:$0xff] %vm421_vm0, %v675_v18 }
 0x382   : > { %953 = shalt.err (!%p950_p3)
}
 0x383   : > { %s954_s15 = scalar_lea.hbm %s1242_s30, 128  ;;  %s958_s0 = scalar_lea.hbm %s1296_s11, 512 }
 0x384   : > { %p955_p4 = scmp.ne.s32.totalorder %s1242_s30, %s954_s15  ;;  %p959_p9 = scmp.lt.u32.totalorder %s1242_s30, %s1296_s11 }
 0x385   : > { %p960_p10 = scmp.lt.u32.totalorder %s958_s0, %s954_s15  ;;  %p962_p12 = scmp.lt.u32.totalorder %s954_s15, %s1242_s30 }
 0x386   : > { %p956_p7 = pnand %p955_p4, %p1108_p5 }
 0x387   : > { %p961_p11 = por %p960_p10, %p959_p9 }
 0x388   : > { %p957_p8 = pneg %p956_p7 }
 0x389   : > { %p963_p13 = por %p962_p12, %p961_p11 }
 0x38b   : > { %p964_p0 = pnand %p963_p13, %p957_p8 }
 0x38d   : > { %967 = shalt.err (!%p964_p0)
}
 0x38e   : > { %892 = dma.vmem_to_hbm [thread:$0]  (%p1108_p5), %s1244_s12, 128, %s1242_s30, %s678_s14  }
 0x38f PF: > { %p898_p1 = scmp.ge.s32.totalorder %s1002_s20, 2  ;;  %s703_s22 = sand.u32 1, %s990_s17  }
 0x390   : > { %s704_s16 = scalar_lea.sflag [#allocation3], %s703_s22 }
 0x391   : > { %p895_p2 = pnand %p898_p1, %p1112_p6 }
 0x393   : > { %985 = dma.done.wait (!%p895_p2), %s704_s16, 128  }
 0x394   : > { %987 = vsyncadd (!%p895_p2), %s704_s16, 4294967168  ;;  %p21_p3 = scmp.ge.s32.totalorder %s1095_s23, 6   ;;  %s1301_s17 = smov %s994_s18 }
 0x395   : > { %s1302_s18 = smov %s998_s19  ;;  %s1303_s19 = smov %s1106_s26 }
 0x396   : > { %s1304_s20 = smov %s1095_s23  ;;  %23 = sbr.rel (!%p21_p3) target bundleno = 5 (0x5), region = 105 }
 0x39d   :  { %709 = vsyncpa [#allocation3], 1 }
 0x39e   :  { %711 = vsyncpa [#allocation3 + $0x1], 1 }

</bundles_post_ra>
